<compile_context>
chip_gen: v6e
topology: v6e:2x2x1
jax: 0.10.0
libtpu: 0.0.40
codegen_flags: <defaults>
</compile_context>

<pallas_src>
import functools

import jax
import jax.numpy as jnp
from jax.experimental import pallas as pl
from jax.experimental.pallas import tpu as pltpu

HIDDEN = 64   # fc1/fc2 width
PAD = 128     # lane width of the final (lane-dense) output tile


def _round_up(a, b):
    return (a + b - 1) // b * b


def qnetwork_kernel(x_ref, w1_ref, w2_ref, w3_ref, b_ref, o_ref):
    """x_ref : (tile_b, state_size) f32   batch tile of raw features
    w1_ref: (state_size, 64)       bf16
    w2_ref: (64, 64)               bf16
    w3_ref: (64, 128)              bf16  (W3 in lanes [0:action_size), rest zero)
    b_ref : (3, 128)               f32   (b1/b2 in lanes [0:64), b3 in lanes [0:action_size))
    o_ref : (tile_b, 128)          f32   Q-values land in lanes [0:action_size)."""
    # fc1 + relu : bf16 matmul on the MXU, f32 bias/ReLU on the VPU.
    x = x_ref[...].astype(jnp.bfloat16)
    h = jnp.dot(x, w1_ref[...], preferred_element_type=jnp.float32)        # (tile, 64)
    h = jnp.maximum(h + b_ref[0:1, :HIDDEN], 0.0)

    # fc2 + relu
    h = jnp.dot(h.astype(jnp.bfloat16), w2_ref[...],
                preferred_element_type=jnp.float32)                         # (tile, 64)
    h = jnp.maximum(h + b_ref[1:2, :HIDDEN], 0.0)

    # fc3 (no activation) -> lane-dense 128-wide tile for unmasked stores.
    out = jnp.dot(h.astype(jnp.bfloat16), w3_ref[...],
                  preferred_element_type=jnp.float32)                       # (tile, 128)
    o_ref[...] = (out + b_ref[2:3, :]).astype(o_ref.dtype)


def pack_params(params, state_size, action_size):
    """Prepare kernel operands: bf16 weights (w3 lane-padded to 128) + one f32 bias buffer."""
    w1 = params["w1"].astype(jnp.bfloat16)                                  # (S, 64)
    w2 = params["w2"].astype(jnp.bfloat16)                                  # (64, 64)
    w3 = jnp.zeros((HIDDEN, PAD), jnp.bfloat16)
    w3 = w3.at[:, :action_size].set(params["w3"].astype(jnp.bfloat16))      # (64, 128)
    b = jnp.zeros((3, PAD), jnp.float32)
    b = b.at[0, :HIDDEN].set(params["b1"].reshape(-1))
    b = b.at[1, :HIDDEN].set(params["b2"].reshape(-1))
    b = b.at[2, :action_size].set(params["b3"].reshape(-1))
    return w1, w2, w3, b


@functools.partial(jax.jit, static_argnames=("state_size", "action_size", "tile_b"))
def qnetwork_forward(x, w1, w2, w3, b, *, state_size, action_size, tile_b=1024):
    """x: (B, state_size) f32. Weights/bias from pack_params. Returns (B, action_size) f32."""
    B = x.shape[0]
    assert x.shape[1] == state_size

    # Batch tile: multiple of 8 sublanes, capped at tile_b, and no larger than ceil(B/2)
    # (rounded to 8) so batches big enough to split always give >= 2 grid steps (v7x: lets
    # dimension_semantics=("parallel",) shard the batch across both TensorCores).
    cap = max(8, _round_up(tile_b, 8))
    half = max(8, _round_up(-(-B // 2), 8))
    tile = min(cap, half)
    b_pad = _round_up(B, tile)

    # Row-only padding of the raw features (16 B/row) -- no lane padding in the wrapper.
    if b_pad != B:
        x = jnp.pad(x, ((0, b_pad - B), (0, 0)))

    grid = (b_pad // tile,)
    flops = 2 * b_pad * (state_size * HIDDEN + HIDDEN * HIDDEN + HIDDEN * PAD)
    bytes_accessed = (4 * b_pad * state_size
                      + 2 * (state_size * HIDDEN + HIDDEN * HIDDEN + HIDDEN * PAD)
                      + 4 * 3 * PAD
                      + 4 * b_pad * PAD)

    out = pl.pallas_call(
        qnetwork_kernel,
        out_shape=jax.ShapeDtypeStruct((b_pad, PAD), jnp.float32),
        grid_spec=pltpu.PrefetchScalarGridSpec(
            num_scalar_prefetch=0,
            grid=grid,
            in_specs=[
                # batch-tiled activations; last dim == full array dim (legal < 128)
                pl.BlockSpec((tile, state_size), lambda i: (i, 0)),
                # weights/biases: constant index_map -> DMA'd once, resident across the grid
                pl.BlockSpec((state_size, HIDDEN), lambda i: (0, 0)),
                pl.BlockSpec((HIDDEN, HIDDEN), lambda i: (0, 0)),
                pl.BlockSpec((HIDDEN, PAD), lambda i: (0, 0)),
                pl.BlockSpec((3, PAD), lambda i: (0, 0)),
            ],
            out_specs=pl.BlockSpec((tile, PAD), lambda i: (i, 0)),
        ),
        compiler_params=pltpu.CompilerParams(
            dimension_semantics=("parallel",),
        ),
        cost_estimate=pl.CostEstimate(
            flops=flops, transcendentals=0, bytes_accessed=bytes_accessed),
    )(x, w1, w2, w3, b)

    return out[:B, :action_size]


def init_params(key, state_size, action_size, hidden=HIDDEN):
    """Deterministic init mimicking nn.Linear's U(-1/sqrt(fan_in), 1/sqrt(fan_in))."""
    ks = jax.random.split(key, 6)

    def linear(kw, kb, fan_in, fan_out):
        bound = 1.0 / jnp.sqrt(jnp.float32(fan_in))
        w = jax.random.uniform(kw, (fan_in, fan_out), jnp.float32, -bound, bound)
        b = jax.random.uniform(kb, (fan_out,), jnp.float32, -bound, bound)
        return w, b

    w1, b1 = linear(ks[0], ks[1], state_size, hidden)
    w2, b2 = linear(ks[2], ks[3], hidden, hidden)
    w3, b3 = linear(ks[4], ks[5], hidden, action_size)
    return {"w1": w1, "b1": b1, "w2": w2, "b2": b2, "w3": w3, "b3": b3}


def qnetwork_ref(x, p):
    """Pure-JAX f32 reference for correctness checking."""
    h1 = jnp.maximum(x @ p["w1"] + p["b1"], 0.0)
    h2 = jnp.maximum(h1 @ p["w2"] + p["b2"], 0.0)
    return h2 @ p["w3"] + p["b3"]


if __name__ == "__main__":
    # CartPole-v1: state_size = 4, action_size = 2.
    STATE_SIZE, ACTION_SIZE, BATCH = 4, 2, 8

    key = jax.random.PRNGKey(0)
    kx, kp = jax.random.split(key)
    x = jax.random.normal(kx, (BATCH, STATE_SIZE), dtype=jnp.float32)
    params = init_params(kp, STATE_SIZE, ACTION_SIZE)
    w1, w2, w3, b = pack_params(params, STATE_SIZE, ACTION_SIZE)

    out = qnetwork_forward(x, w1, w2, w3, b,
                           state_size=STATE_SIZE, action_size=ACTION_SIZE)
    out = jax.block_until_ready(out)

    ref = qnetwork_ref(x, params)
    assert out.shape == (BATCH, ACTION_SIZE)
    # bf16 MXU operands -> compare against the f32 reference with bf16-level tolerance.
    assert jnp.allclose(out, ref, atol=2e-2, rtol=2e-2)

    # Also exercise a replay-buffer-sized batch (grid > 1, non-multiple of tile).
    xb = jax.random.normal(kx, (1000, STATE_SIZE), dtype=jnp.float32)
    outb = jax.block_until_ready(
        qnetwork_forward(xb, w1, w2, w3, b,
                         state_size=STATE_SIZE, action_size=ACTION_SIZE))
    assert outb.shape == (1000, ACTION_SIZE)
    assert jnp.allclose(outb, qnetwork_ref(xb, params), atol=2e-2, rtol=2e-2)

    print("KERNEL_OK")
</pallas_src>

<mosaic_0001>
module attributes {stable_mosaic.version = 11 : i64} {
  func.func @qnetwork_kernel(%arg0: i32, %arg1: memref<8x4xf32, #tpu.memory_space<vmem>>, %arg2: memref<4x64xbf16, #tpu.memory_space<vmem>>, %arg3: memref<64x64xbf16, #tpu.memory_space<vmem>>, %arg4: memref<64x128xbf16, #tpu.memory_space<vmem>>, %arg5: memref<3x128xf32, #tpu.memory_space<vmem>>, %arg6: memref<8x128xf32, #tpu.memory_space<vmem>>) attributes {dimension_semantics = [#tpu.dimension_semantics<parallel>], iteration_bounds = array<i64: 1>, scalar_prefetch = 0 : i64, scratch_operands = 0 : i64, tpu.core_type = #tpu.core_type<tc>, window_params = [{transform_indices = @transform_0, window_bounds = array<i64: 8, 4>}, {pipeline_mode = #tpu.pipeline_mode<synchronous>, transform_indices = @transform_1, window_bounds = array<i64: 4, 64>}, {pipeline_mode = #tpu.pipeline_mode<synchronous>, transform_indices = @transform_2, window_bounds = array<i64: 64, 64>}, {pipeline_mode = #tpu.pipeline_mode<synchronous>, transform_indices = @transform_3, window_bounds = array<i64: 64, 128>}, {pipeline_mode = #tpu.pipeline_mode<synchronous>, transform_indices = @transform_4, window_bounds = array<i64: 3, 128>}, {transform_indices = @transform_5, window_bounds = array<i64: 8, 128>}]} {
    %c0 = arith.constant 0 : index
    %c0_0 = arith.constant 0 : index
    %0 = vector.load %arg1[%c0, %c0_0] : memref<8x4xf32, #tpu.memory_space<vmem>>, vector<8x4xf32>
    %1 = arith.truncf %0 : vector<8x4xf32> to vector<8x4xbf16>
    %c0_1 = arith.constant 0 : index
    %c0_2 = arith.constant 0 : index
    %2 = vector.load %arg2[%c0_1, %c0_2] : memref<4x64xbf16, #tpu.memory_space<vmem>>, vector<4x64xbf16>
    %cst = arith.constant dense<0.000000e+00> : vector<8x64xf32>
    %3 = tpu.matmul %1, %2, %cst {dimension_numbers = #tpu.dot_dimension_numbers<[1], [0], [0], [1], [0, 0, 1, 1], [], []>} : vector<8x4xbf16>, vector<4x64xbf16>, vector<8x64xf32> -> vector<8x64xf32>
    %c0_3 = arith.constant 0 : index
    %c0_4 = arith.constant 0 : index
    %4 = vector.load %arg5[%c0_3, %c0_4] : memref<3x128xf32, #tpu.memory_space<vmem>>, vector<1x64xf32>
    %5 = vector.broadcast %4 : vector<1x64xf32> to vector<8x64xf32>
    %6 = arith.addf %3, %5 : vector<8x64xf32>
    %cst_5 = arith.constant 0.000000e+00 : f32
    %7 = vector.broadcast %cst_5 : f32 to vector<8x64xf32>
    %8 = arith.maximumf %6, %7 : vector<8x64xf32>
    %9 = arith.truncf %8 : vector<8x64xf32> to vector<8x64xbf16>
    %c0_6 = arith.constant 0 : index
    %c0_7 = arith.constant 0 : index
    %10 = vector.load %arg3[%c0_6, %c0_7] : memref<64x64xbf16, #tpu.memory_space<vmem>>, vector<64x64xbf16>
    %cst_8 = arith.constant dense<0.000000e+00> : vector<8x64xf32>
    %11 = tpu.matmul %9, %10, %cst_8 {dimension_numbers = #tpu.dot_dimension_numbers<[1], [0], [0], [1], [0, 0, 1, 1], [], []>} : vector<8x64xbf16>, vector<64x64xbf16>, vector<8x64xf32> -> vector<8x64xf32>
    %c1 = arith.constant 1 : index
    %c0_9 = arith.constant 0 : index
    %12 = vector.load %arg5[%c1, %c0_9] : memref<3x128xf32, #tpu.memory_space<vmem>>, vector<1x64xf32>
    %13 = vector.broadcast %12 : vector<1x64xf32> to vector<8x64xf32>
    %14 = arith.addf %11, %13 : vector<8x64xf32>
    %cst_10 = arith.constant 0.000000e+00 : f32
    %15 = vector.broadcast %cst_10 : f32 to vector<8x64xf32>
    %16 = arith.maximumf %14, %15 : vector<8x64xf32>
    %17 = arith.truncf %16 : vector<8x64xf32> to vector<8x64xbf16>
    %c0_11 = arith.constant 0 : index
    %c0_12 = arith.constant 0 : index
    %18 = vector.load %arg4[%c0_11, %c0_12] : memref<64x128xbf16, #tpu.memory_space<vmem>>, vector<64x128xbf16>
    %cst_13 = arith.constant dense<0.000000e+00> : vector<8x128xf32>
    %19 = tpu.matmul %17, %18, %cst_13 {dimension_numbers = #tpu.dot_dimension_numbers<[1], [0], [0], [1], [0, 0, 1, 1], [], []>} : vector<8x64xbf16>, vector<64x128xbf16>, vector<8x128xf32> -> vector<8x128xf32>
    %c2 = arith.constant 2 : index
    %c0_14 = arith.constant 0 : index
    %20 = vector.load %arg5[%c2, %c0_14] : memref<3x128xf32, #tpu.memory_space<vmem>>, vector<1x128xf32>
    %21 = vector.broadcast %20 : vector<1x128xf32> to vector<8x128xf32>
    %22 = arith.addf %19, %21 : vector<8x128xf32>
    %c0_15 = arith.constant 0 : index
    %c0_16 = arith.constant 0 : index
    %23 = vector.load %arg6[%c0_15, %c0_16] : memref<8x128xf32, #tpu.memory_space<vmem>>, vector<8x128xf32>
    tpu.vector_store %arg6[%c0_15, %c0_16], %22 {strides = array<i32>} : memref<8x128xf32, #tpu.memory_space<vmem>>, vector<8x128xf32>,
    return
  }
  func.func @transform_0(%arg0: i32) -> (i32, i32) {
    %c0_i32 = arith.constant 0 : i32
    %c0_i32_0 = arith.constant 0 : i32
    return %arg0, %c0_i32 : i32, i32
  }
  func.func @transform_1(%arg0: i32) -> (i32, i32) {
    %c0_i32 = arith.constant 0 : i32
    %c0_i32_0 = arith.constant 0 : i32
    %c0_i32_1 = arith.constant 0 : i32
    return %c0_i32, %c0_i32_0 : i32, i32
  }
  func.func @transform_2(%arg0: i32) -> (i32, i32) {
    %c0_i32 = arith.constant 0 : i32
    %c0_i32_0 = arith.constant 0 : i32
    %c0_i32_1 = arith.constant 0 : i32
    return %c0_i32, %c0_i32_0 : i32, i32
  }
  func.func @transform_3(%arg0: i32) -> (i32, i32) {
    %c0_i32 = arith.constant 0 : i32
    %c0_i32_0 = arith.constant 0 : i32
    %c0_i32_1 = arith.constant 0 : i32
    return %c0_i32, %c0_i32_0 : i32, i32
  }
  func.func @transform_4(%arg0: i32) -> (i32, i32) {
    %c0_i32 = arith.constant 0 : i32
    %c0_i32_0 = arith.constant 0 : i32
    %c0_i32_1 = arith.constant 0 : i32
    return %c0_i32, %c0_i32_0 : i32, i32
  }
  func.func @transform_5(%arg0: i32) -> (i32, i32) {
    %c0_i32 = arith.constant 0 : i32
    %c0_i32_0 = arith.constant 0 : i32
    return %arg0, %c0_i32 : i32, i32
  }
}

</mosaic_0001>

<bundles_post_ra>
// kernel: qnetwork_forward.1
= control target key start
LH: loop header
LB: loop body
LE: loop exit
PB: predicated region body
PF: predicated region fallthrough
CT: control target
= control target key end

     0   :  { %10 = vsyncpa [#allocation3], 0  ;;  %s456_s0 = inlined_call_operand.vmem [shape: f32[8,4], index: 0, kind: input, shape index: {}]   ;;  %s457_s1 = inlined_call_operand.vmem [shape: bf16[4,64], index: 1, kind: input, shape index: {}]   ;;  %s458_s2 = inlined_call_operand.hbm [shape: bf16[64,64], index: 2, kind: input, shape index: {}]   ;;  %s459_s3 = inlined_call_operand.hbm [shape: bf16[64,128], index: 3, kind: input, shape index: {}]   ;;  %s460_s4 = inlined_call_operand.vmem [shape: f32[3,128], index: 4, kind: input, shape index: {}]   ;;  %s461_s5 = inlined_call_operand.vmem [shape: f32[8,128], index: 5, kind: output, shape index: {}]  }
   0x1   :  { %11 = vsyncpa [#allocation5], 0  ;;  %s391_s18 = smov [#allocation2]  }
   0x2   :  { %s21_s19 = sshll.u32 %s391_s18, 4  ;;  %s22_s19 = int_to_ptr.vmem [resolvable:$true] %s21_s19 }
   0x3   :  { %s355_s20 = scalar_lea.vmem %s22_s19, 512  ;;  %p360_p1 = scmp.lt.s32.totalorder %s22_s19, %s22_s19 }
   0x4   :  { %p356_p0 = scmp.ne.s32.totalorder %s22_s19, %s355_s20  ;;  %p361_p2 = scmp.lt.s32.totalorder %s355_s20, %s355_s20 }
   0x6   :  { %p362_p3 = por %p361_p2, %p360_p1 }
   0x8   :  { %p363_p4 = pnand %p362_p3, %p356_p0 }
   0xa   :  { %366 = shalt.err (!%p363_p4)
}
   0xb   :  { %s392_s21 = smov 64   ;;  %s393_s22 = smov 4  }
   0xc   :  { %27 = dma.hbm_to_vmem [thread:$0]  %s458_s2, 512, %s22_s19, [#allocation3], %s392_s21, %s392_s21, %s393_s22  }
   0xd   :  { %s394_s25 = smov [#allocation4]  }
   0xe   :  { %s33_s26 = sshll.u32 %s394_s25, 4  ;;  %s34_s26 = int_to_ptr.vmem [resolvable:$true] %s33_s26 }
   0xf   :  { %s375_s27 = scalar_lea.vmem %s34_s26, 512  ;;  %p380_p6 = scmp.lt.s32.totalorder %s34_s26, %s34_s26 }
  0x10   :  { %p376_p5 = scmp.ne.s32.totalorder %s34_s26, %s375_s27  ;;  %p381_p7 = scmp.lt.s32.totalorder %s375_s27, %s375_s27 }
  0x12   :  { %p382_p8 = por %p381_p7, %p380_p6 }
  0x14   :  { %p383_p9 = pnand %p382_p8, %p376_p5 }
  0x16   :  { %386 = shalt.err (!%p383_p9)
}
  0x17   :  { %39 = dma.hbm_to_vmem [thread:$0]  %s459_s3, 512, %s34_s26, [#allocation5], %s392_s21, %s392_s21, %s393_s22  }
  0x18   :  { %387 = dma.done.wait [#allocation3], 512  }
  0x19   :  { %388 = vsyncadd [#allocation3], 4294966784 }
  0x1a   :  { %389 = dma.done.wait [#allocation5], 512  }
  0x1b   :  { %390 = vsyncadd [#allocation5], 4294966784  ;;  %v395_v0 = vmov 0.0   ;;  %vm396_vm0 = vmmov 0   ;;  %vm61_vm1 = vcmask 1041408   ;;  %v49_v2 = vld [vmem:[%s456_s0] sm:$0xff] }
  0x1c   :  { %303 = vmatprep.subr.bf16.mxu0 %v395_v0  ;;  %305 = vmatprep.mubr.msk.bf16.mxu0 %vm396_vm0, %v395_v0  ;;  %v51_v1 = vld [vmem:[%s457_s1] sm:$0x3]  ;;  %v50_v4 = vpack.c.bf16 %v49_v2, %v49_v2  ;;  %v339_v5 = vld [vmem:[#allocation2 + $0x18] sm:$0xff]   ;;  %vm57_vm2 = vcmask 31744   ;;  %v340_v6 = vld [vmem:[#allocation2 + $0x10] sm:$0xff]   ;;  %vm144_vm3 = vcmask 523264  }
  0x1d   :  { %309 = vmatprep.subr.bf16.mxu1 %v395_v0  ;;  %317 = vmatprep.mubr.msk.bf16.mxu1 %vm396_vm0, %v395_v0  ;;  %v63_v3 = vsel %vm61_vm1, %v51_v1, 0  ;;  %v341_v7 = vld [vmem:[#allocation2 + $0x8] sm:$0xff]   ;;  %v342_v8 = vld [vmem:[#allocation2] sm:$0xff]   ;;  %v343_v9 = vld [vmem:[#allocation4 + $0x18] sm:$0xff]  }
  0x1e   :  { %304 = vmatpush3.bf16.msra.mxu0 %v63_v3  ;;  %310 = vmatpush3.bf16.msra.mxu1 %v339_v5  ;;  %v344_v10 = vld [vmem:[#allocation4 + $0x10] sm:$0xff]   ;;  %v277_v11 = vld [vmem:[%s460_s4] ss:$0 sm:$0xff]  ;;  %v345_v19 = vld [vmem:[#allocation4 + $0x8] sm:$0xff]  }
  0x1f   :  { %321 = vmatprep.subr.bf16.mxu0 %v395_v0  ;;  %311 = vmatprep.subr.bf16.mxu1 %v395_v0  ;;  %v346_v20 = vld [vmem:[#allocation4] sm:$0xff]  }
  0x20   :  { %v279_v21 = vld [vmem:[%s460_s4 + $0x1] ss:$0 sm:$0xff]  ;;  %v285_v29 = vld [vmem:[%s460_s4 + $0x2] ss:$0 sm:$0xff] }
  0x21   :  { %306 = vmatmul.mubr.msk.bf16.vlgmr.msra.gmra.mxu0 %vm57_vm2, %v50_v4 }
  0x22   :  { %329 = vmatprep.mubr.msk.bf16.mxu0 %vm396_vm0, %v395_v0  ;;  %312 = vmatpush3.bf16.msra.mxu1 %v340_v6 }
  0x23   :  { %313 = vmatprep.subr.bf16.mxu1 %v395_v0  ;;  %322 = vmatpush3.bf16.msra.mxu0 %v343_v9 }
  0x24   :  { %323 = vmatprep.subr.bf16.mxu0 %v395_v0 }
  0x26   :  { %314 = vmatpush3.bf16.msra.mxu1 %v341_v7 }
  0x27   :  { %315 = vmatprep.subr.bf16.mxu1 %v395_v0  ;;  %324 = vmatpush3.bf16.msra.mxu0 %v344_v10 }
  0x28   :  { %325 = vmatprep.subr.bf16.mxu0 %v395_v0 }
  0x2a   :  { %316 = vmatpush3.bf16.msra.mxu1 %v342_v8 }
  0x2b   :  { %326 = vmatpush3.bf16.msra.mxu0 %v345_v19 }
  0x2c   :  { %327 = vmatprep.subr.bf16.mxu0 %v395_v0 }
  0x2f   :  { %328 = vmatpush3.bf16.msra.mxu0 %v346_v20 }
  0xe1   :  { %v99_v12 = vpop.f32.mrf.mxu0 }
  0xe2   :  { %v100_v13 = vadd.f32 %v277_v11, %v99_v12 }
  0xe3   :  { %v307_v14 = vpop.f32.mrf.mxu0 }
  0xe4   :  { %v105_v15 = vmax.f32 %v100_v13, 0.0 }
  0xe5   :  { %v102_v16 = vpop.f32.mrf.mxu0 }
  0xe6   :  { %v106_v17 = vpack.c.bf16 %v105_v15, %v105_v15 }
  0xe7   :  { %v308_v18 = vpop.f32.mrf.mxu0 }
  0xe8   :  { %318 = vmatmul.mubr.msk.bf16.vlgmr.msra.gmra.mxu1 %vm144_vm3, %v106_v17 }
 0x1a8   :  { %v182_v22 = vpop.f32.mrf.mxu1 }
 0x1a9   :  { %v183_v23 = vadd.f32 %v279_v21, %v182_v22 }
 0x1aa   :  { %v319_v24 = vpop.f32.mrf.mxu1 }
 0x1ab   :  { %v188_v25 = vmax.f32 %v183_v23, 0.0 }
 0x1ac   :  { %v185_v26 = vpop.f32.mrf.mxu1 }
 0x1ad   :  { %v189_v27 = vpack.c.bf16 %v188_v25, %v188_v25 }
 0x1ae   :  { %v320_v28 = vpop.f32.mrf.mxu1 }
 0x1af   :  { %330 = vmatmul.mubr.msk.bf16.vlgmr.msra.gmra.mxu0 %vm144_vm3, %v189_v27 }
 0x26f   :  { %v264_v30 = vpop.f32.mrf.mxu0 }
 0x270   :  { %v265_v31 = vadd.f32 %v285_v29, %v264_v30 }
 0x271   :  { %v331_v32 = vpop.f32.mrf.mxu0 }
 0x272   :  { %270 = vst [vmem:[%s461_s5] sm:$0xff] %v265_v31 }
 0x273   :  { %v267_v33 = vpop.f32.mrf.mxu0 }
 0x275   :  { %v332_v34 = vpop.f32.mrf.mxu0 }
 0x276   :  { %275 = vsyncpa [#allocation3], 1 }
 0x277   :  { %276 = vsyncpa [#allocation5], 1 }

</bundles_post_ra>
